<compile_context>
chip_gen: v7x
topology: tpu7x:2x2x1
jax: 0.10.0
libtpu: 0.0.40
codegen_flags: <defaults>
</compile_context>

<pallas_src>
import functools

import jax
import jax.numpy as jnp
from jax import lax
from jax.experimental import pallas as pl
from jax.experimental.pallas import tpu as pltpu

WORLD_SIZE = 1  # tensor-model-parallel world size (single device -> identity comms)


def _round_up(x, m):
    return ((x + m - 1) // m) * m


def _dot_nt(x, w):
    """X (tm, tk) contracted with W (tn, tk) over the last dims -> (tm, tn)."""
    return lax.dot_general(
        x, w,
        dimension_numbers=(((1,), (1,)), ((), ())),
        preferred_element_type=jnp.float32,
    )


def _linear_kernel_single_k(x_ref, w_ref, b_ref, o_ref):
    """Whole K fits in one tile: no accumulator scratch, direct epilogue."""
    o_ref[...] = (
        _dot_nt(x_ref[...], w_ref[...]) + b_ref[...].astype(jnp.float32)
    ).astype(o_ref.dtype)


def _linear_kernel_multi_k(x_ref, w_ref, b_ref, o_ref, acc_ref):
    """One (tm, tn) output tile of Y = X @ W^T + b, accumulated over K."""
    k = pl.program_id(2)
    part = _dot_nt(x_ref[...], w_ref[...])

    @pl.when(k == 0)
    def _():
        acc_ref[...] = part          # assign on first step (no zero-init store)

    @pl.when(k > 0)
    def _():
        acc_ref[...] += part

    @pl.when(k == pl.num_programs(2) - 1)
    def _():
        # Bias add fused into the matmul epilogue, in f32, then one cast.
        o_ref[...] = (acc_ref[...] + b_ref[...].astype(jnp.float32)).astype(
            o_ref.dtype
        )


@functools.partial(jax.jit, static_argnames=("tm", "tn", "tk", "compute_dtype"))
def column_parallel_linear(x, weight, bias, *, tm=None, tn=None, tk=None,
                           compute_dtype=None):
    """Y = X @ weight^T + bias.

    x:      (..., K)  activations
    weight: (N, K)    PyTorch-layout weight (output_size_per_partition, input_size)
    bias:   (N,)      bias (zero-initialized in the module)
    returns (..., N)
    """
    *lead, K = x.shape
    N, K_w = weight.shape
    assert K == K_w, "weight/input contraction dim mismatch"
    M = 1
    for d in lead:
        M *= d

    out_dtype = x.dtype
    x2d = x.reshape(M, K)
    w = weight
    if compute_dtype is not None:
        # bf16 inputs -> bf16-native MXU; accumulation stays f32 in the kernel.
        x2d = x2d.astype(compute_dtype)
        w = w.astype(compute_dtype)
    b2d = bias.reshape(1, N)

    itemsize = jnp.dtype(x2d.dtype).itemsize
    w_itemsize = jnp.dtype(w.dtype).itemsize
    out_itemsize = jnp.dtype(out_dtype).itemsize
    b_itemsize = jnp.dtype(b2d.dtype).itemsize
    sub = (8 * 4) // itemsize  # min sublane tile: 8 (f32), 16 (bf16), 32 (int8)

    # Defaults: big tiles that fit the default scoped VMEM on every generation
    # (v5e 16 MiB / v6e 32 MiB / v7x 32 MiB of 64 MiB physical).  Callers can
    # override per-generation (e.g. tk=2048 on v6e with a raised vmem limit).
    tm = tm or min(512, _round_up(M, sub))
    tn = tn or min(512, _round_up(N, 128))   # lane-dense output (>=128)
    tk = tk or min(1024, _round_up(K, 128))

    # Pad to tile multiples (zero-padding K is exact for the contraction;
    # padded M/N rows/cols are sliced off below).
    Mp, Np, Kp = _round_up(M, tm), _round_up(N, tn), _round_up(K, tk)
    if (Mp, Kp) != (M, K):
        x2d = jnp.pad(x2d, ((0, Mp - M), (0, Kp - K)))
    if (Np, Kp) != (N, K):
        w = jnp.pad(w, ((0, Np - N), (0, Kp - K)))
    if Np != N:
        b2d = jnp.pad(b2d, ((0, 0), (0, Np - N)))

    grid = (Mp // tm, Np // tn, Kp // tk)
    single_k = grid[2] == 1

    # Double-buffered inputs + output tile (+ f32 accumulator), with headroom.
    tile_vmem = (
        2 * (tm * tk * itemsize + tn * tk * w_itemsize + tn * b_itemsize)
        + 2 * tm * tn * out_itemsize
        + (0 if single_k else tm * tn * 4)
    )
    vmem_limit = int(min(64 * 1024 * 1024, max(2 * tile_vmem, 16 * 1024 * 1024)))

    cost = pl.CostEstimate(
        flops=2 * Mp * Np * Kp,
        bytes_accessed=(
            Mp * Kp * itemsize * grid[1]        # X re-streamed per N tile
            + Np * Kp * w_itemsize * grid[0]    # W re-streamed per M tile
            + Mp * Np * out_itemsize
        ),
        transcendentals=0,
    )

    kernel = _linear_kernel_single_k if single_k else _linear_kernel_multi_k
    scratch = [] if single_k else [pltpu.VMEM((tm, tn), jnp.float32)]

    out2d = pl.pallas_call(
        kernel,
        out_shape=jax.ShapeDtypeStruct((Mp, Np), out_dtype),
        grid_spec=pltpu.PrefetchScalarGridSpec(
            num_scalar_prefetch=0,
            grid=grid,
            in_specs=[
                pl.BlockSpec((tm, tk), lambda i, j, k: (i, k)),   # X tile
                pl.BlockSpec((tn, tk), lambda i, j, k: (j, k)),   # W tile (N, K)
                pl.BlockSpec((1, tn), lambda i, j, k: (0, j)),    # bias tile
            ],
            out_specs=pl.BlockSpec((tm, tn), lambda i, j, k: (i, j)),
            scratch_shapes=scratch,
        ),
        compiler_params=pltpu.CompilerParams(
            dimension_semantics=("parallel", "parallel", "arbitrary"),
            vmem_limit_bytes=vmem_limit,
        ),
        cost_estimate=cost,
    )(x2d, w, b2d)

    if (Mp, Np) != (M, N):
        out2d = out2d[:M, :N]
    return out2d.reshape(*lead, N)


class ColumnParallelLinearJAX:
    """Single-device equivalent of the PyTorch ColumnParallelLinear module."""

    def __init__(self, input_size, output_size, bias=True, gather_output=True,
                 key=None, dtype=jnp.float32):
        assert output_size % WORLD_SIZE == 0
        self.input_size = input_size
        self.output_size = output_size
        self.output_size_per_partition = output_size // WORLD_SIZE
        self.gather_output = gather_output
        key = key if key is not None else jax.random.PRNGKey(0)
        # Matches Parameter(torch.randn(out_per_partition, input_size)).
        self.weight = jax.random.normal(
            key, (self.output_size_per_partition, self.input_size), dtype=dtype
        )
        # Bias is always initialized to zero in the module.
        self.bias = (
            jnp.zeros((self.output_size_per_partition,), dtype=dtype)
            if bias else None
        )

    def __call__(self, x, **tile_overrides):
        # copy_to_tensor_model_parallel_region / gather_from_* are identities
        # in the forward pass at world_size = 1.
        # TODO(synk): multi-device all-gather of output partitions
        #             (gather_output) would need make_async_remote_copy.
        b = self.bias if self.bias is not None else jnp.zeros(
            (self.output_size_per_partition,), dtype=x.dtype
        )
        return column_parallel_linear(x, self.weight, b, **tile_overrides)


if __name__ == "__main__":
    key = jax.random.PRNGKey(0)
    k_w, k_x, k_w2, k_x2 = jax.random.split(key, 4)

    # --- Test 1: small, single-K-tile fast path -----------------------------
    batch, seq, input_size, output_size = 2, 8, 32, 64
    layer = ColumnParallelLinearJAX(input_size, output_size, bias=True, key=k_w)
    x = jax.random.normal(k_x, (batch, seq, input_size), dtype=jnp.float32)

    y = jax.block_until_ready(layer(x))
    y_ref = x @ layer.weight.T + layer.bias
    assert y.shape == (batch, seq, output_size)
    assert jnp.allclose(y, y_ref, atol=1e-5, rtol=1e-5)

    # --- Test 2: ragged shapes + multi-K accumulation path (tk override) ----
    batch2, seq2, in2, out2 = 3, 5, 160, 200
    layer2 = ColumnParallelLinearJAX(in2, out2, bias=True, key=k_w2)
    x2 = jax.random.normal(k_x2, (batch2, seq2, in2), dtype=jnp.float32)

    y2 = jax.block_until_ready(layer2(x2, tk=128))  # forces 2 K steps + padding
    y2_ref = x2 @ layer2.weight.T + layer2.bias
    assert y2.shape == (batch2, seq2, out2)
    assert jnp.allclose(y2, y2_ref, atol=1e-4, rtol=1e-4)

    print("KERNEL_OK")
</pallas_src>

<mosaic_0001>
module attributes {stable_mosaic.version = 11 : i64} {
  func.func @_linear_kernel_single_k(%arg0: i32, %arg1: i32, %arg2: i32, %arg3: memref<16x128xf32, #tpu.memory_space<vmem>>, %arg4: memref<128x128xf32, #tpu.memory_space<vmem>>, %arg5: memref<1x128xf32, #tpu.memory_space<vmem>>, %arg6: memref<16x128xf32, #tpu.memory_space<vmem>>) attributes {dimension_semantics = [#tpu.dimension_semantics<parallel>, #tpu.dimension_semantics<parallel>, #tpu.dimension_semantics<arbitrary>], iteration_bounds = array<i64: 1, 1, 1>, scalar_prefetch = 0 : i64, scratch_operands = 0 : i64, tpu.core_type = #tpu.core_type<tc>, window_params = [{transform_indices = @transform_0, window_bounds = array<i64: 16, 128>}, {transform_indices = @transform_1, window_bounds = array<i64: 128, 128>}, {transform_indices = @transform_2, window_bounds = array<i64: 1, 128>}, {transform_indices = @transform_3, window_bounds = array<i64: 16, 128>}]} {
    %c0 = arith.constant 0 : index
    %c0_0 = arith.constant 0 : index
    %0 = vector.load %arg3[%c0, %c0_0] : memref<16x128xf32, #tpu.memory_space<vmem>>, vector<16x128xf32>
    %c0_1 = arith.constant 0 : index
    %c0_2 = arith.constant 0 : index
    %1 = vector.load %arg4[%c0_1, %c0_2] : memref<128x128xf32, #tpu.memory_space<vmem>>, vector<128x128xf32>
    %cst = arith.constant dense<0.000000e+00> : vector<16x128xf32>
    %2 = tpu.matmul %0, %1, %cst {dimension_numbers = #tpu.dot_dimension_numbers<[1], [1], [0], [0], [0, 0, 1, 0], [], []>} : vector<16x128xf32>, vector<128x128xf32>, vector<16x128xf32> -> vector<16x128xf32>
    %c0_3 = arith.constant 0 : index
    %c0_4 = arith.constant 0 : index
    %3 = vector.load %arg5[%c0_3, %c0_4] : memref<1x128xf32, #tpu.memory_space<vmem>>, vector<1x128xf32>
    %4 = vector.broadcast %3 : vector<1x128xf32> to vector<16x128xf32>
    %5 = arith.addf %2, %4 : vector<16x128xf32>
    %c0_5 = arith.constant 0 : index
    %c0_6 = arith.constant 0 : index
    %6 = vector.load %arg6[%c0_5, %c0_6] : memref<16x128xf32, #tpu.memory_space<vmem>>, vector<16x128xf32>
    tpu.vector_store %arg6[%c0_5, %c0_6], %5 {strides = array<i32>} : memref<16x128xf32, #tpu.memory_space<vmem>>, vector<16x128xf32>,
    return
  }
  func.func @transform_0(%arg0: i32, %arg1: i32, %arg2: i32) -> (i32, i32) {
    %c0_i32 = arith.constant 0 : i32
    return %arg0, %arg2 : i32, i32
  }
  func.func @transform_1(%arg0: i32, %arg1: i32, %arg2: i32) -> (i32, i32) {
    %c0_i32 = arith.constant 0 : i32
    return %arg1, %arg2 : i32, i32
  }
  func.func @transform_2(%arg0: i32, %arg1: i32, %arg2: i32) -> (i32, i32) {
    %c0_i32 = arith.constant 0 : i32
    %c0_i32_0 = arith.constant 0 : i32
    return %c0_i32, %arg1 : i32, i32
  }
  func.func @transform_3(%arg0: i32, %arg1: i32, %arg2: i32) -> (i32, i32) {
    %c0_i32 = arith.constant 0 : i32
    return %arg0, %arg1 : i32, i32
  }
}

</mosaic_0001>

<bundles_post_ra>
// kernel: column_parallel_linear.1
= control target key start
LH: loop header
LB: loop body
LE: loop exit
PB: predicated region body
PF: predicated region fallthrough
CT: control target
= control target key end

     0   :  { %s289_s1 = inlined_call_operand.vmem [shape: f32[128,128], index: 1, kind: input, shape index: {}]   ;;  %s290_s0 = inlined_call_operand.vmem [shape: f32[16,128], index: 0, kind: input, shape index: {}]   ;;  %s291_s2 = inlined_call_operand.vmem [shape: f32[1,128], index: 2, kind: input, shape index: {}]   ;;  %s292_s3 = inlined_call_operand.vmem [shape: f32[16,128], index: 3, kind: output, shape index: {}]  }
   0x1   :  { %v16_v0 = vld [vmem:[%s289_s1] sm:$0xff]  ;;  %v17_v1 = vld [vmem:[%s289_s1 + $0x8] sm:$0xff]  ;;  %v18_v2 = vld [vmem:[%s289_s1 + $0x10] sm:$0xff] }
   0x2   :  { %v174_v3 = vpack.c.bf16 %v17_v1, %v16_v0  ;;  %v19_v4 = vld [vmem:[%s289_s1 + $0x18] sm:$0xff]  ;;  %v14_v6 = vld [vmem:[%s290_s0] sm:$0xff]  ;;  %v21_v8 = vld [vmem:[%s289_s1 + $0x28] sm:$0xff] }
   0x3   :  { %v178_v5 = vpack.c.bf16 %v19_v4, %v18_v2  ;;  %v20_v7 = vld [vmem:[%s289_s1 + $0x20] sm:$0xff]  ;;  %171 = vmatprep.mubr.f32.mxu0 %v14_v6  ;;  %v22_v10 = vld [vmem:[%s289_s1 + $0x30] sm:$0xff]  ;;  %v23_v11 = vld [vmem:[%s289_s1 + $0x38] sm:$0xff] }
   0x4   :  { %175 = vmatprep.subr.bf16.mxu0 %v174_v3  ;;  %v182_v9 = vpack.c.bf16 %v21_v8, %v20_v7  ;;  %v186_v12 = vpack.c.bf16 %v23_v11, %v22_v10  ;;  %v24_v13 = vld [vmem:[%s289_s1 + $0x40] sm:$0xff]  ;;  %v25_v14 = vld [vmem:[%s289_s1 + $0x48] sm:$0xff]  ;;  %v26_v16 = vld [vmem:[%s289_s1 + $0x50] sm:$0xff] }
   0x5   :  { %177 = vmatpush3.bf16.xpose.msra.mxu0 %v174_v3  ;;  %v190_v15 = vpack.c.bf16 %v25_v14, %v24_v13  ;;  %v27_v17 = vld [vmem:[%s289_s1 + $0x58] sm:$0xff]  ;;  %v28_v19 = vld [vmem:[%s289_s1 + $0x60] sm:$0xff]  ;;  %v29_v20 = vld [vmem:[%s289_s1 + $0x68] sm:$0xff] }
   0x6   :  { %179 = vmatprep.subr.bf16.mxu0 %v178_v5  ;;  %v194_v18 = vpack.c.bf16 %v27_v17, %v26_v16  ;;  %v198_v21 = vpack.c.bf16 %v29_v20, %v28_v19  ;;  %v30_v22 = vld [vmem:[%s289_s1 + $0x70] sm:$0xff]  ;;  %v31_v23 = vld [vmem:[%s289_s1 + $0x78] sm:$0xff]  ;;  %v15_v25 = vld [vmem:[%s290_s0 + $0x8] sm:$0xff] }
   0x7   :  { %v202_v24 = vpack.c.bf16 %v31_v23, %v30_v22  ;;  %v120_v26 = vld [vmem:[%s291_s2] ss:$0 sm:$0xff] }
   0xd   :  { %181 = vmatpush3.bf16.xpose.msra.mxu0 %v178_v5 }
   0xe   :  { %183 = vmatprep.subr.bf16.mxu0 %v182_v9 }
  0x15   :  { %185 = vmatpush3.bf16.xpose.msra.mxu0 %v182_v9 }
  0x16   :  { %187 = vmatprep.subr.bf16.mxu0 %v186_v12 }
  0x1d   :  { %189 = vmatpush3.bf16.xpose.msra.mxu0 %v186_v12 }
  0x1e   :  { %191 = vmatprep.subr.bf16.mxu0 %v190_v15 }
  0x25   :  { %193 = vmatpush3.bf16.xpose.msra.mxu0 %v190_v15 }
  0x26   :  { %195 = vmatprep.subr.bf16.mxu0 %v194_v18 }
  0x2d   :  { %197 = vmatpush3.bf16.xpose.msra.mxu0 %v194_v18 }
  0x2e   :  { %199 = vmatprep.subr.bf16.mxu0 %v198_v21 }
  0x35   :  { %201 = vmatpush3.bf16.xpose.msra.mxu0 %v198_v21 }
  0x36   :  { %203 = vmatprep.subr.bf16.mxu0 %v202_v24 }
  0x3d   :  { %205 = vmatpush3.bf16.xpose.msra.mxu0 %v202_v24 }
  0x44   :  { %172 = vmatmul.mubr.f32.vlgmr.msra.gmra.mrb[0].mxu0 %v15_v25 }
 0x117   :  { %v173_v27 = vpop.f32.mrb[0].mxu0 }
 0x118   :  { %v111_v28 = vadd.f32 %v173_v27, %v120_v26  ;;  %v105_v29 = vpop.f32.mrb[1].mxu0 }
 0x119   :  { %v106_v30 = vadd.f32 %v120_v26, %v105_v29 }
 0x11a   :  { %115 = vst [vmem:[%s292_s3 + $0x8] sm:$0xff] %v111_v28 }
 0x11b   :  { %114 = vst [vmem:[%s292_s3] sm:$0xff] %v106_v30 }

</bundles_post_ra>
